<compile_context>
chip_gen: v7x
topology: tpu7x:2x2x1
jax: 0.10.0
libtpu: 0.0.40
codegen_flags: <defaults>
</compile_context>

<pallas_src>
import functools

import jax
import jax.numpy as jnp
from jax.experimental import pallas as pl
from jax.experimental.pallas import tpu as pltpu


def _round_up(x, m):
    return (x + m - 1) // m * m


def _patch_proj_kernel(x_ref, w_ref, b_ref, o_ref):
    # x_ref: (tm, K)  bf16 flattened patches
    # w_ref: (K, Ep)  bf16 projection weight (conv weight reshaped/transposed, E padded)
    # b_ref: (1, Ep)  f32 conv bias (E padded)
    # o_ref: (tm, Ep) f32 lane-dense output tile
    acc = jnp.dot(x_ref[...], w_ref[...], preferred_element_type=jnp.float32)
    o_ref[...] = (acc + b_ref[...]).astype(o_ref.dtype)


@functools.partial(jax.jit, static_argnames=("patch_size",))
def patch_embed_forward(x, weight, bias, *, patch_size):
    """x: (B, C, H, W) NCHW.  weight: (E, C, p, p) PyTorch conv layout.
    bias: (E,).  Returns (B, N, E) with N = (H//p)*(W//p), matching
    `proj(x).flatten(2).transpose(1, 2)` (bf16 inputs, f32 accumulation)."""
    B, C, H, W = x.shape
    p = patch_size
    E = weight.shape[0]
    assert H % p == 0 and W % p == 0, "H and W must be divisible by patch_size"
    Hp, Wp = H // p, W // p
    N = Hp * Wp
    K = C * p * p
    M = B * N

    # --- glue: extract non-overlapping patches, flatten in (C, ph, pw) order ---
    # (B, C, Hp, p, Wp, p) -> (B, Hp, Wp, C, p, p) -> (B*N, C*p*p), kept in bf16.
    patches = x.reshape(B, C, Hp, p, Wp, p)
    patches = jnp.transpose(patches, (0, 2, 4, 1, 3, 5))
    patches = patches.reshape(M, K).astype(jnp.bfloat16)

    # [opt1] lane-dense output: pad E up to a multiple of 128.
    E_pad = _round_up(E, 128)
    w_mat = weight.reshape(E, K).T.astype(jnp.bfloat16)          # (K, E)
    w_mat = jnp.pad(w_mat, ((0, 0), (0, E_pad - E)))             # (K, E_pad)
    b_mat = jnp.pad(bias.astype(jnp.float32), (0, E_pad - E)).reshape(1, E_pad)

    # [opt2] big M tile; pad M with zero rows so the last tile is full.
    tm = min(512, _round_up(M, 8))
    M_pad = _round_up(M, tm)
    if M_pad != M:
        patches = jnp.pad(patches, ((0, M_pad - M), (0, 0)))

    grid = (M_pad // tm,)

    # [opt8] advisory cost estimate for the XLA scheduler.
    bytes_accessed = (
        patches.size * patches.dtype.itemsize
        + w_mat.size * w_mat.dtype.itemsize
        + b_mat.size * b_mat.dtype.itemsize
        + M_pad * E_pad * 4  # f32 output
    )
    cost = pl.CostEstimate(
        flops=2 * M_pad * K * E_pad,
        transcendentals=0,
        bytes_accessed=bytes_accessed,
    )

    out = pl.pallas_call(
        _patch_proj_kernel,
        out_shape=jax.ShapeDtypeStruct((M_pad, E_pad), jnp.float32),
        grid_spec=pltpu.PrefetchScalarGridSpec(
            num_scalar_prefetch=0,
            grid=grid,
            in_specs=[
                # K is the full lane extent of the patch matrix (see [opt7]).
                pl.BlockSpec((tm, K), lambda i: (i, 0)),
                # Invariant weight/bias blocks; default buffering on purpose [opt5].
                pl.BlockSpec((K, E_pad), lambda i: (0, 0)),
                pl.BlockSpec((1, E_pad), lambda i: (0, 0)),
            ],
            out_specs=pl.BlockSpec((tm, E_pad), lambda i: (i, 0)),
        ),
        compiler_params=pltpu.CompilerParams(
            dimension_semantics=("parallel",),  # [opt6] grid splits across TCs
        ),
        cost_estimate=cost,
    )(patches, w_mat, b_mat)

    # Strip M/E padding and restore (B, N, E).
    return out[:M, :E].reshape(B, N, E)


def _reference(x, weight, bias, patch_size):
    """Pure-JAX reference: nn.Conv2d(stride=kernel=patch) + flatten(2).transpose(1,2),
    applied to the same bf16-rounded inputs the kernel consumes."""
    xq = x.astype(jnp.bfloat16).astype(jnp.float32)
    wq = weight.astype(jnp.bfloat16).astype(jnp.float32)
    y = jax.lax.conv_general_dilated(
        xq, wq,
        window_strides=(patch_size, patch_size),
        padding="VALID",
        dimension_numbers=("NCHW", "OIHW", "NCHW"),
        precision=jax.lax.Precision.HIGHEST,
    )
    y = y + bias.astype(jnp.float32).reshape(1, -1, 1, 1)
    B, E, Hp, Wp = y.shape
    return jnp.transpose(y.reshape(B, E, Hp * Wp), (0, 2, 1))


if __name__ == "__main__":
    key = jax.random.PRNGKey(0)

    # Case 1: small shapes (B=2, C=4, 16x16, patch=2, E=32) — exercises E padding.
    # Case 2: larger (B=2, C=3, 96x96, patch=4, E=96) — exercises multi-step grid
    #         (tm=512, M=1152 -> M_pad=1536) and the padded last tile.
    cases = [
        (2, 4, 16, 16, 2, 32),
        (2, 3, 96, 96, 4, 96),
    ]

    for (B, C, H, W, p, E) in cases:
        key, kx, kw, kb = jax.random.split(key, 4)
        x = jax.random.normal(kx, (B, C, H, W), dtype=jnp.float32)

        fan_in = C * p * p
        bound = 1.0 / (fan_in ** 0.5)
        weight = jax.random.uniform(kw, (E, C, p, p), jnp.float32, -bound, bound)
        bias = jax.random.uniform(kb, (E,), jnp.float32, -bound, bound)

        out = patch_embed_forward(x, weight, bias, patch_size=p)
        out = jax.block_until_ready(out)

        ref = _reference(x, weight, bias, p)
        assert out.shape == (B, (H // p) * (W // p), E)
        err = float(jnp.max(jnp.abs(out - ref)))
        assert err < 1e-3, f"mismatch vs conv reference (max abs err {err})"

    print("KERNEL_OK")
</pallas_src>

<mosaic_0001>
module attributes {stable_mosaic.version = 11 : i64} {
  func.func @_patch_proj_kernel(%arg0: i32, %arg1: memref<128x16xbf16, #tpu.memory_space<vmem>>, %arg2: memref<16x128xbf16, #tpu.memory_space<vmem>>, %arg3: memref<1x128xf32, #tpu.memory_space<vmem>>, %arg4: memref<128x128xf32, #tpu.memory_space<vmem>>) attributes {dimension_semantics = [#tpu.dimension_semantics<parallel>], iteration_bounds = array<i64: 1>, scalar_prefetch = 0 : i64, scratch_operands = 0 : i64, tpu.core_type = #tpu.core_type<tc>, window_params = [{transform_indices = @transform_0, window_bounds = array<i64: 128, 16>}, {pipeline_mode = #tpu.pipeline_mode<synchronous>, transform_indices = @transform_1, window_bounds = array<i64: 16, 128>}, {pipeline_mode = #tpu.pipeline_mode<synchronous>, transform_indices = @transform_2, window_bounds = array<i64: 1, 128>}, {transform_indices = @transform_3, window_bounds = array<i64: 128, 128>}]} {
    %c0 = arith.constant 0 : index
    %c0_0 = arith.constant 0 : index
    %0 = vector.load %arg1[%c0, %c0_0] : memref<128x16xbf16, #tpu.memory_space<vmem>>, vector<128x16xbf16>
    %c0_1 = arith.constant 0 : index
    %c0_2 = arith.constant 0 : index
    %1 = vector.load %arg2[%c0_1, %c0_2] : memref<16x128xbf16, #tpu.memory_space<vmem>>, vector<16x128xbf16>
    %cst = arith.constant dense<0.000000e+00> : vector<128x128xf32>
    %2 = tpu.matmul %0, %1, %cst {dimension_numbers = #tpu.dot_dimension_numbers<[1], [0], [0], [1], [0, 0, 1, 1], [], []>} : vector<128x16xbf16>, vector<16x128xbf16>, vector<128x128xf32> -> vector<128x128xf32>
    %c0_3 = arith.constant 0 : index
    %c0_4 = arith.constant 0 : index
    %3 = vector.load %arg3[%c0_3, %c0_4] : memref<1x128xf32, #tpu.memory_space<vmem>>, vector<1x128xf32>
    %4 = vector.broadcast %3 : vector<1x128xf32> to vector<128x128xf32>
    %5 = arith.addf %2, %4 : vector<128x128xf32>
    %c0_5 = arith.constant 0 : index
    %c0_6 = arith.constant 0 : index
    %6 = vector.load %arg4[%c0_5, %c0_6] : memref<128x128xf32, #tpu.memory_space<vmem>>, vector<128x128xf32>
    tpu.vector_store %arg4[%c0_5, %c0_6], %5 {strides = array<i32>} : memref<128x128xf32, #tpu.memory_space<vmem>>, vector<128x128xf32>,
    return
  }
  func.func @transform_0(%arg0: i32) -> (i32, i32) {
    %c0_i32 = arith.constant 0 : i32
    %c0_i32_0 = arith.constant 0 : i32
    return %arg0, %c0_i32 : i32, i32
  }
  func.func @transform_1(%arg0: i32) -> (i32, i32) {
    %c0_i32 = arith.constant 0 : i32
    %c0_i32_0 = arith.constant 0 : i32
    %c0_i32_1 = arith.constant 0 : i32
    return %c0_i32, %c0_i32_0 : i32, i32
  }
  func.func @transform_2(%arg0: i32) -> (i32, i32) {
    %c0_i32 = arith.constant 0 : i32
    %c0_i32_0 = arith.constant 0 : i32
    %c0_i32_1 = arith.constant 0 : i32
    return %c0_i32, %c0_i32_0 : i32, i32
  }
  func.func @transform_3(%arg0: i32) -> (i32, i32) {
    %c0_i32 = arith.constant 0 : i32
    %c0_i32_0 = arith.constant 0 : i32
    return %arg0, %c0_i32 : i32, i32
  }
}

</mosaic_0001>

<bundles_post_ra>
// kernel: patch_embed_forward.1
= control target key start
LH: loop header
LB: loop body
LE: loop exit
PB: predicated region body
PF: predicated region fallthrough
CT: control target
= control target key end

     0   :  { %vm86_vm0 = vcmask 130048   ;;  %s390_s1 = inlined_call_operand.vmem [shape: bf16[16,128], index: 1, kind: input, shape index: {}]   ;;  %s391_s0 = inlined_call_operand.vmem [shape: bf16[128,16], index: 0, kind: input, shape index: {}]   ;;  %s392_s2 = inlined_call_operand.vmem [shape: f32[1,128], index: 2, kind: input, shape index: {}]   ;;  %s393_s3 = inlined_call_operand.vmem [shape: f32[128,128], index: 3, kind: output, shape index: {}]  }
   0x1   :  { %v275_v0 = vld [vmem:[%s390_s1] sm:$0xff]   ;;  %v278_v3 = vld [vmem:[%s391_s0 + $0x8] sm:$0xff]   ;;  %v280_v5 = vld [vmem:[%s391_s0 + $0x10] sm:$0xff]  }
   0x2   :  { %v276_v1 = vld [vmem:[%s391_s0] sm:$0xff]   ;;  %255 = vmatprep.subr.bf16.mxu0 %v275_v0  ;;  %273 = vmatprep.subr.bf16.mxu1 %v275_v0  ;;  %v279_v4 = vld [vmem:[%s391_s0 + $0x28] sm:$0xff]   ;;  %v281_v6 = vld [vmem:[%s391_s0 + $0x30] sm:$0xff]  }
   0x3   :  { %v277_v2 = vld [vmem:[%s391_s0 + $0x20] sm:$0xff]   ;;  %256 = vmatpush3.bf16.msra.mxu0 %v275_v0  ;;  %274 = vmatpush3.bf16.msra.mxu1 %v275_v0  ;;  %v282_v7 = vld [vmem:[%s391_s0 + $0x18] sm:$0xff]  }
   0x4   :  { %257 = vmatprep.mubr.msk.bf16.mxu0 %vm86_vm0, %v276_v1  ;;  %265 = vmatprep.mubr.msk.bf16.mxu1 %vm86_vm0, %v277_v2  ;;  %v283_v8 = vld [vmem:[%s391_s0 + $0x38] sm:$0xff]   ;;  %v228_v9 = vld [vmem:[%s392_s2] ss:$0 sm:$0xff] }
   0x6   :  { %258 = vmatmul.mubr.msk.bf16.vlgmr.msra.gmra.mrb[0].mxu0 %vm86_vm0, %v278_v3  ;;  %266 = vmatmul.mubr.msk.bf16.vlgmr.msra.gmra.mrb[0].mxu1 %vm86_vm0, %v279_v4 }
   0x7   :  { %261 = vmatprep.mubr.msk.bf16.mxu0 %vm86_vm0, %v280_v5  ;;  %269 = vmatprep.mubr.msk.bf16.mxu1 %vm86_vm0, %v281_v6 }
   0xe   :  { %262 = vmatmul.mubr.msk.bf16.gmra.mrb[4].mxu0 %vm86_vm0, %v282_v7  ;;  %270 = vmatmul.mubr.msk.bf16.gmra.mrb[4].mxu1 %vm86_vm0, %v283_v8 }
  0xd9   :  { %v259_v10 = vpop.f32.mrb[0].mxu0  ;;  %v267_v11 = vpop.f32.mrb[0].mxu1 }
  0xda   :  { %v154_v12 = vadd.f32 %v259_v10, %v228_v9  ;;  %v186_v13 = vadd.f32 %v267_v11, %v228_v9  ;;  %v145_v14 = vpop.f32.mrb[1].mxu0  ;;  %v177_v15 = vpop.f32.mrb[1].mxu1 }
  0xdb   :  { %v146_v16 = vadd.f32 %v228_v9, %v145_v14  ;;  %v178_v17 = vadd.f32 %v228_v9, %v177_v15  ;;  %v260_v18 = vpop.f32.mrb[2].mxu0  ;;  %v268_v19 = vpop.f32.mrb[2].mxu1 }
  0xdc   :  { %210 = vst [vmem:[%s393_s3 + $0x10] sm:$0xff] %v154_v12  ;;  %218 = vst [vmem:[%s393_s3 + $0x50] sm:$0xff] %v186_v13  ;;  %v157_v20 = vadd.f32 %v260_v18, %v228_v9  ;;  %v189_v21 = vadd.f32 %v268_v19, %v228_v9  ;;  %v148_v22 = vpop.f32.mrb[3].mxu0  ;;  %v180_v23 = vpop.f32.mrb[3].mxu1 }
  0xdd   :  { %208 = vst [vmem:[%s393_s3] sm:$0xff] %v146_v16  ;;  %216 = vst [vmem:[%s393_s3 + $0x40] sm:$0xff] %v178_v17  ;;  %v149_v24 = vadd.f32 %v228_v9, %v148_v22  ;;  %v181_v25 = vadd.f32 %v228_v9, %v180_v23 }
  0xde   :  { %211 = vst [vmem:[%s393_s3 + $0x18] sm:$0xff] %v157_v20  ;;  %219 = vst [vmem:[%s393_s3 + $0x58] sm:$0xff] %v189_v21 }
  0xdf   :  { %209 = vst [vmem:[%s393_s3 + $0x8] sm:$0xff] %v149_v24  ;;  %217 = vst [vmem:[%s393_s3 + $0x48] sm:$0xff] %v181_v25 }
  0xe1   :  { %v263_v26 = vpop.f32.mrb[4].mxu0  ;;  %v271_v27 = vpop.f32.mrb[4].mxu1 }
  0xe2   :  { %v170_v28 = vadd.f32 %v263_v26, %v228_v9  ;;  %v202_v29 = vadd.f32 %v271_v27, %v228_v9  ;;  %v161_v30 = vpop.f32.mrb[5].mxu0  ;;  %v193_v31 = vpop.f32.mrb[5].mxu1 }
  0xe3   :  { %v162_v32 = vadd.f32 %v228_v9, %v161_v30  ;;  %v194_v33 = vadd.f32 %v228_v9, %v193_v31  ;;  %v264_v34 = vpop.f32.mrb[6].mxu0  ;;  %v272_v35 = vpop.f32.mrb[6].mxu1 }
  0xe4   :  { %214 = vst [vmem:[%s393_s3 + $0x30] sm:$0xff] %v170_v28  ;;  %222 = vst [vmem:[%s393_s3 + $0x70] sm:$0xff] %v202_v29  ;;  %v173_v36 = vadd.f32 %v264_v34, %v228_v9  ;;  %v205_v37 = vadd.f32 %v272_v35, %v228_v9  ;;  %v164_v38 = vpop.f32.mrb[7].mxu0  ;;  %v196_v39 = vpop.f32.mrb[7].mxu1 }
  0xe5   :  { %212 = vst [vmem:[%s393_s3 + $0x20] sm:$0xff] %v162_v32  ;;  %220 = vst [vmem:[%s393_s3 + $0x60] sm:$0xff] %v194_v33  ;;  %v165_v40 = vadd.f32 %v228_v9, %v164_v38  ;;  %v197_v41 = vadd.f32 %v228_v9, %v196_v39 }
  0xe6   :  { %215 = vst [vmem:[%s393_s3 + $0x38] sm:$0xff] %v173_v36  ;;  %223 = vst [vmem:[%s393_s3 + $0x78] sm:$0xff] %v205_v37 }
  0xe7   :  { %213 = vst [vmem:[%s393_s3 + $0x28] sm:$0xff] %v165_v40  ;;  %221 = vst [vmem:[%s393_s3 + $0x68] sm:$0xff] %v197_v41 }

</bundles_post_ra>
